<compile_context>
chip_gen: v7x
topology: tpu7x:2x2x1
jax: 0.10.0
libtpu: 0.0.40
codegen_flags: <defaults>
</compile_context>

<pallas_src>
import math

import jax
import jax.numpy as jnp
from jax import lax
from jax.experimental import pallas as pl
from jax.experimental.pallas import tpu as pltpu


# ---------------------------------------------------------------------------
# helpers
# ---------------------------------------------------------------------------
def _round_up(x, m):
    return (x + m - 1) // m * m


def _tile_and_pad(dim, target, base):
    """Pick a tile (<= target, multiple of `base`) and the padded extent."""
    tile = min(target, _round_up(dim, base))
    return tile, _round_up(dim, tile)


def _pad2d(a, rows, cols):
    pr, pc = rows - a.shape[0], cols - a.shape[1]
    if pr == 0 and pc == 0:
        return a
    return jnp.pad(a, ((0, pr), (0, pc)))


# ---------------------------------------------------------------------------
# kernels
# ---------------------------------------------------------------------------
def _noisy_linear_train_kernel(x_ref, wmu_ref, wsig_ref, eout_ref, ein_ref,
                               bmu_ref, bsig_ref, beps_ref, o_ref, acc_ref):
    k = pl.program_id(2)

    @pl.when(k == 0)
    def _():
        acc_ref[...] = jnp.zeros_like(acc_ref)

    # Rank-1 factorised noise: the (tn, tk) epsilon tile is formed on the VPU from
    # tiny eps vectors already in VMEM -> only mu and sigma tiles stream from HBM.
    w = wmu_ref[...] + wsig_ref[...] * (eout_ref[...] * ein_ref[...])       # (tn, tk)
    # Contract last dims of x(tb,tk) and w(tn,tk): feeds the MXU with no relayout.
    acc_ref[...] += lax.dot_general(
        x_ref[...], w,
        dimension_numbers=(((1,), (1,)), ((), ())),
        preferred_element_type=jnp.float32)

    @pl.when(k == pl.num_programs(2) - 1)
    def _():
        b = bmu_ref[...] + bsig_ref[...] * beps_ref[...]                    # (1, tn)
        o_ref[...] = (acc_ref[...] + b).astype(o_ref.dtype)


def _linear_eval_kernel(x_ref, wmu_ref, bmu_ref, o_ref, acc_ref):
    k = pl.program_id(2)

    @pl.when(k == 0)
    def _():
        acc_ref[...] = jnp.zeros_like(acc_ref)

    acc_ref[...] += lax.dot_general(
        x_ref[...], wmu_ref[...],
        dimension_numbers=(((1,), (1,)), ((), ())),
        preferred_element_type=jnp.float32)

    @pl.when(k == pl.num_programs(2) - 1)
    def _():
        o_ref[...] = (acc_ref[...] + bmu_ref[...]).astype(o_ref.dtype)


# ---------------------------------------------------------------------------
# wrapper
# ---------------------------------------------------------------------------
_TB_TARGET = 256   # batch tile (sublane axis)
_TN_TARGET = 256   # out-feature tile (output lane axis; MXU-friendly on v6e/v7x)
_TK_TARGET = 512   # reduction tile (lane-dense weight DMA)


def noisy_linear(x, weight_mu, weight_sigma, bias_mu, bias_sigma,
                 eps_in, eps_out, *, training=True):
    """Forward pass of NoisyLinear.

    weight_epsilon = outer(eps_out, eps_in), bias_epsilon = eps_out — exactly what
    the module's reset_noise() produces; we keep the rank-1 factors instead of
    materializing the (Out, In) epsilon buffer.
    """
    B, In = x.shape
    Out = weight_mu.shape[0]
    dtype = x.dtype

    tb, B_p = _tile_and_pad(B, _TB_TARGET, 8)
    tn, Out_p = _tile_and_pad(Out, _TN_TARGET, 128)
    tk, In_p = _tile_and_pad(In, _TK_TARGET, 128)
    grid = (B_p // tb, Out_p // tn, In_p // tk)

    x_p = _pad2d(x, B_p, In_p)
    wmu_p = _pad2d(weight_mu, Out_p, In_p)
    bmu_p = _pad2d(bias_mu.reshape(1, Out), 1, Out_p)

    compiler_params = pltpu.CompilerParams(
        dimension_semantics=("parallel", "parallel", "arbitrary"),
        # 2 weight streams x 2 buffers x tn*tk*4B + x + acc + bias vectors << 32 MiB,
        # safe on v5e/v6e (128 MiB) and v7x (64 MiB physical).
        vmem_limit_bytes=32 * 1024 * 1024,
    )

    x_spec = pl.BlockSpec((tb, tk), lambda i, j, k: (i, k))
    w_spec = pl.BlockSpec((tn, tk), lambda i, j, k: (j, k))
    bias_spec = pl.BlockSpec((1, tn), lambda i, j, k: (0, j))
    out_spec = pl.BlockSpec((tb, tn), lambda i, j, k: (i, j))
    scratch = [pltpu.VMEM((tb, tn), jnp.float32)]
    out_shape = jax.ShapeDtypeStruct((B_p, Out_p), dtype)

    if training:
        wsig_p = _pad2d(weight_sigma, Out_p, In_p)
        bsig_p = _pad2d(bias_sigma.reshape(1, Out), 1, Out_p)
        eout_col = _pad2d(eps_out.reshape(Out, 1), Out_p, 1)    # (Out_p, 1)
        ein_row = _pad2d(eps_in.reshape(1, In), 1, In_p)        # (1, In_p)
        beps_p = _pad2d(eps_out.reshape(1, Out), 1, Out_p)      # bias_epsilon == eps_out

        bytes_accessed = 4 * (B_p * In_p + 2 * Out_p * In_p + In_p
                              + 4 * Out_p + B_p * Out_p)
        cost = pl.CostEstimate(flops=2 * B_p * In_p * Out_p + 3 * Out_p * In_p,
                               transcendentals=0,
                               bytes_accessed=bytes_accessed)

        y_p = pl.pallas_call(
            _noisy_linear_train_kernel,
            out_shape=out_shape,
            grid=grid,
            in_specs=[
                x_spec,
                w_spec,                                          # weight_mu
                w_spec,                                          # weight_sigma
                pl.BlockSpec((tn, 1), lambda i, j, k: (j, 0)),   # eps_out (column)
                pl.BlockSpec((1, tk), lambda i, j, k: (0, k)),   # eps_in (row)
                bias_spec,                                       # bias_mu
                bias_spec,                                       # bias_sigma
                bias_spec,                                       # bias_epsilon (= eps_out)
            ],
            out_specs=out_spec,
            scratch_shapes=scratch,
            compiler_params=compiler_params,
            cost_estimate=cost,
        )(x_p, wmu_p, wsig_p, eout_col, ein_row, bmu_p, bsig_p, beps_p)
    else:
        # Dedicated eval path: streams only weight_mu and bias_mu (no zeroed sigma /
        # epsilon traffic).
        bytes_accessed = 4 * (B_p * In_p + Out_p * In_p + Out_p + B_p * Out_p)
        cost = pl.CostEstimate(flops=2 * B_p * In_p * Out_p,
                               transcendentals=0,
                               bytes_accessed=bytes_accessed)

        y_p = pl.pallas_call(
            _linear_eval_kernel,
            out_shape=out_shape,
            grid=grid,
            in_specs=[x_spec, w_spec, bias_spec],
            out_specs=out_spec,
            scratch_shapes=scratch,
            compiler_params=compiler_params,
            cost_estimate=cost,
        )(x_p, wmu_p, bmu_p)

    return y_p[:B, :Out]


# ---------------------------------------------------------------------------
# parameter / noise init (mirrors reset_parameters + reset_noise)
# ---------------------------------------------------------------------------
def _scale_noise(key, size):
    # x.sign() * x.abs().sqrt() for x ~ N(0,1)
    x = jax.random.normal(key, (size,), dtype=jnp.float32)
    return jnp.sign(x) * jnp.sqrt(jnp.abs(x))


def init_noisy_linear_params(key, in_features, out_features, std_init=0.5):
    k1, k2, k3, k4 = jax.random.split(key, 4)
    mu_range = 1.0 / math.sqrt(in_features)
    weight_mu = jax.random.uniform(
        k1, (out_features, in_features), jnp.float32, -mu_range, mu_range)
    bias_mu = jax.random.uniform(
        k2, (out_features,), jnp.float32, -mu_range, mu_range)
    weight_sigma = jnp.full((out_features, in_features),
                            std_init / math.sqrt(in_features), jnp.float32)
    bias_sigma = jnp.full((out_features,),
                          std_init / math.sqrt(out_features), jnp.float32)
    # reset_noise(): keep the rank-1 factors (weight_epsilon = outer(eps_out, eps_in),
    # bias_epsilon = eps_out) instead of materializing the (Out, In) buffer.
    eps_in = _scale_noise(k3, in_features)
    eps_out = _scale_noise(k4, out_features)
    return dict(weight_mu=weight_mu, weight_sigma=weight_sigma,
                bias_mu=bias_mu, bias_sigma=bias_sigma,
                eps_in=eps_in, eps_out=eps_out)


if __name__ == "__main__":
    key = jax.random.PRNGKey(0)
    k_param, k_x, k_param2 = jax.random.split(key, 3)

    # Small shapes consistent with the module (RL-style noisy head).
    in_features, out_features, batch = 32, 64, 8
    params = init_noisy_linear_params(k_param, in_features, out_features)
    x = jax.random.normal(k_x, (batch, in_features), dtype=jnp.float32)

    # Training-mode forward.
    y = jax.block_until_ready(noisy_linear(
        x, params["weight_mu"], params["weight_sigma"],
        params["bias_mu"], params["bias_sigma"],
        params["eps_in"], params["eps_out"], training=True))

    w_full = params["weight_mu"] + params["weight_sigma"] * jnp.outer(
        params["eps_out"], params["eps_in"])
    b_full = params["bias_mu"] + params["bias_sigma"] * params["eps_out"]
    y_ref = x @ w_full.T + b_full
    assert y.shape == (batch, out_features)
    assert jnp.allclose(y, y_ref, atol=1e-5, rtol=1e-5)

    # Eval-mode forward (dedicated kernel, only mu / bias_mu streamed).
    y_eval = jax.block_until_ready(noisy_linear(
        x, params["weight_mu"], params["weight_sigma"],
        params["bias_mu"], params["bias_sigma"],
        params["eps_in"], params["eps_out"], training=False))
    y_eval_ref = x @ params["weight_mu"].T + params["bias_mu"]
    assert jnp.allclose(y_eval, y_eval_ref, atol=1e-5, rtol=1e-5)

    # Non-multiple shape exercising padding, multiple output tiles and the K grid.
    in2, out2, batch2 = 1152, 384, 24
    params2 = init_noisy_linear_params(k_param2, in2, out2)
    x2 = jax.random.normal(jax.random.PRNGKey(1), (batch2, in2), dtype=jnp.float32)
    y2 = jax.block_until_ready(noisy_linear(
        x2, params2["weight_mu"], params2["weight_sigma"],
        params2["bias_mu"], params2["bias_sigma"],
        params2["eps_in"], params2["eps_out"], training=True))
    w2 = params2["weight_mu"] + params2["weight_sigma"] * jnp.outer(
        params2["eps_out"], params2["eps_in"])
    b2 = params2["bias_mu"] + params2["bias_sigma"] * params2["eps_out"]
    y2_ref = x2 @ w2.T + b2
    assert y2.shape == (batch2, out2)
    assert jnp.allclose(y2, y2_ref, atol=2e-4, rtol=2e-4)

    print("KERNEL_OK")
</pallas_src>

<mosaic_0001>
module attributes {stable_mosaic.version = 11 : i64} {
  func.func @_noisy_linear_train_kernel(%arg0: i32, %arg1: i32, %arg2: i32, %arg3: memref<8x128xf32, #tpu.memory_space<vmem>>, %arg4: memref<128x128xf32, #tpu.memory_space<vmem>>, %arg5: memref<128x128xf32, #tpu.memory_space<vmem>>, %arg6: memref<128x1xf32, #tpu.memory_space<vmem>>, %arg7: memref<1x128xf32, #tpu.memory_space<vmem>>, %arg8: memref<1x128xf32, #tpu.memory_space<vmem>>, %arg9: memref<1x128xf32, #tpu.memory_space<vmem>>, %arg10: memref<1x128xf32, #tpu.memory_space<vmem>>, %arg11: memref<8x128xf32, #tpu.memory_space<vmem>>, %arg12: memref<8x128xf32, #tpu.memory_space<vmem>>) attributes {dimension_semantics = [#tpu.dimension_semantics<parallel>, #tpu.dimension_semantics<parallel>, #tpu.dimension_semantics<arbitrary>], iteration_bounds = array<i64: 1, 1, 1>, scalar_prefetch = 0 : i64, scratch_operands = 1 : i64, tpu.core_type = #tpu.core_type<tc>, window_params = [{transform_indices = @transform_0, window_bounds = array<i64: 8, 128>}, {transform_indices = @transform_1, window_bounds = array<i64: 128, 128>}, {transform_indices = @transform_2, window_bounds = array<i64: 128, 128>}, {transform_indices = @transform_3, window_bounds = array<i64: 128, 1>}, {transform_indices = @transform_4, window_bounds = array<i64: 1, 128>}, {transform_indices = @transform_5, window_bounds = array<i64: 1, 128>}, {transform_indices = @transform_6, window_bounds = array<i64: 1, 128>}, {transform_indices = @transform_7, window_bounds = array<i64: 1, 128>}, {transform_indices = @transform_8, window_bounds = array<i64: 8, 128>}]} {
    %c0_i32 = arith.constant 0 : i32
    %0 = arith.cmpi eq, %arg2, %c0_i32 : i32
    %1 = arith.extui %0 : i1 to i32
    %c0_i32_0 = arith.constant 0 : i32
    %2 = arith.cmpi ne, %1, %c0_i32_0 : i32
    scf.if %2 {
      %cst_16 = arith.constant 0.000000e+00 : f32
      %20 = vector.broadcast %cst_16 : f32 to vector<8x128xf32>
      %c0_17 = arith.constant 0 : index
      %c0_18 = arith.constant 0 : index
      %21 = vector.load %arg12[%c0_17, %c0_18] : memref<8x128xf32, #tpu.memory_space<vmem>>, vector<8x128xf32>
      tpu.vector_store %arg12[%c0_17, %c0_18], %20 {strides = array<i32>} : memref<8x128xf32, #tpu.memory_space<vmem>>, vector<8x128xf32>,
    } else {
    }
    %c0 = arith.constant 0 : index
    %c0_1 = arith.constant 0 : index
    %3 = vector.load %arg4[%c0, %c0_1] : memref<128x128xf32, #tpu.memory_space<vmem>>, vector<128x128xf32>
    %c0_2 = arith.constant 0 : index
    %c0_3 = arith.constant 0 : index
    %4 = vector.load %arg5[%c0_2, %c0_3] : memref<128x128xf32, #tpu.memory_space<vmem>>, vector<128x128xf32>
    %c0_4 = arith.constant 0 : index
    %c0_5 = arith.constant 0 : index
    %5 = vector.load %arg6[%c0_4, %c0_5] : memref<128x1xf32, #tpu.memory_space<vmem>>, vector<128x1xf32>
    %c0_6 = arith.constant 0 : index
    %c0_7 = arith.constant 0 : index
    %6 = vector.load %arg7[%c0_6, %c0_7] : memref<1x128xf32, #tpu.memory_space<vmem>>, vector<1x128xf32>
    %7 = vector.broadcast %5 : vector<128x1xf32> to vector<128x128xf32>
    %8 = vector.broadcast %6 : vector<1x128xf32> to vector<128x128xf32>
    %9 = arith.mulf %7, %8 : vector<128x128xf32>
    %10 = arith.mulf %4, %9 : vector<128x128xf32>
    %11 = arith.addf %3, %10 : vector<128x128xf32>
    %c0_8 = arith.constant 0 : index
    %c0_9 = arith.constant 0 : index
    %12 = vector.load %arg12[%c0_8, %c0_9] : memref<8x128xf32, #tpu.memory_space<vmem>>, vector<8x128xf32>
    %c0_10 = arith.constant 0 : index
    %c0_11 = arith.constant 0 : index
    %13 = vector.load %arg3[%c0_10, %c0_11] : memref<8x128xf32, #tpu.memory_space<vmem>>, vector<8x128xf32>
    %cst = arith.constant dense<0.000000e+00> : vector<8x128xf32>
    %14 = tpu.matmul %13, %11, %cst {dimension_numbers = #tpu.dot_dimension_numbers<[1], [1], [0], [0], [0, 0, 1, 0], [], []>} : vector<8x128xf32>, vector<128x128xf32>, vector<8x128xf32> -> vector<8x128xf32>
    %15 = arith.addf %12, %14 : vector<8x128xf32>
    %c0_12 = arith.constant 0 : index
    %c0_13 = arith.constant 0 : index
    %16 = vector.load %arg12[%c0_12, %c0_13] : memref<8x128xf32, #tpu.memory_space<vmem>>, vector<8x128xf32>
    tpu.vector_store %arg12[%c0_12, %c0_13], %15 {strides = array<i32>} : memref<8x128xf32, #tpu.memory_space<vmem>>, vector<8x128xf32>,
    %c0_i32_14 = arith.constant 0 : i32
    %17 = arith.cmpi eq, %arg2, %c0_i32_14 : i32
    %18 = arith.extui %17 : i1 to i32
    %c0_i32_15 = arith.constant 0 : i32
    %19 = arith.cmpi ne, %18, %c0_i32_15 : i32
    scf.if %19 {
      %c0_16 = arith.constant 0 : index
      %c0_17 = arith.constant 0 : index
      %20 = vector.load %arg8[%c0_16, %c0_17] : memref<1x128xf32, #tpu.memory_space<vmem>>, vector<1x128xf32>
      %c0_18 = arith.constant 0 : index
      %c0_19 = arith.constant 0 : index
      %21 = vector.load %arg9[%c0_18, %c0_19] : memref<1x128xf32, #tpu.memory_space<vmem>>, vector<1x128xf32>
      %c0_20 = arith.constant 0 : index
      %c0_21 = arith.constant 0 : index
      %22 = vector.load %arg10[%c0_20, %c0_21] : memref<1x128xf32, #tpu.memory_space<vmem>>, vector<1x128xf32>
      %23 = arith.mulf %21, %22 : vector<1x128xf32>
      %24 = arith.addf %20, %23 : vector<1x128xf32>
      %c0_22 = arith.constant 0 : index
      %c0_23 = arith.constant 0 : index
      %25 = vector.load %arg12[%c0_22, %c0_23] : memref<8x128xf32, #tpu.memory_space<vmem>>, vector<8x128xf32>
      %26 = vector.broadcast %24 : vector<1x128xf32> to vector<8x128xf32>
      %27 = arith.addf %25, %26 : vector<8x128xf32>
      %c0_24 = arith.constant 0 : index
      %c0_25 = arith.constant 0 : index
      %28 = vector.load %arg11[%c0_24, %c0_25] : memref<8x128xf32, #tpu.memory_space<vmem>>, vector<8x128xf32>
      tpu.vector_store %arg11[%c0_24, %c0_25], %27 {strides = array<i32>} : memref<8x128xf32, #tpu.memory_space<vmem>>, vector<8x128xf32>,
    } else {
    }
    return
  }
  func.func @transform_0(%arg0: i32, %arg1: i32, %arg2: i32) -> (i32, i32) {
    %c0_i32 = arith.constant 0 : i32
    return %arg0, %arg2 : i32, i32
  }
  func.func @transform_1(%arg0: i32, %arg1: i32, %arg2: i32) -> (i32, i32) {
    %c0_i32 = arith.constant 0 : i32
    return %arg1, %arg2 : i32, i32
  }
  func.func @transform_2(%arg0: i32, %arg1: i32, %arg2: i32) -> (i32, i32) {
    %c0_i32 = arith.constant 0 : i32
    return %arg1, %arg2 : i32, i32
  }
  func.func @transform_3(%arg0: i32, %arg1: i32, %arg2: i32) -> (i32, i32) {
    %c0_i32 = arith.constant 0 : i32
    %c0_i32_0 = arith.constant 0 : i32
    return %arg1, %c0_i32 : i32, i32
  }
  func.func @transform_4(%arg0: i32, %arg1: i32, %arg2: i32) -> (i32, i32) {
    %c0_i32 = arith.constant 0 : i32
    %c0_i32_0 = arith.constant 0 : i32
    return %c0_i32, %arg2 : i32, i32
  }
  func.func @transform_5(%arg0: i32, %arg1: i32, %arg2: i32) -> (i32, i32) {
    %c0_i32 = arith.constant 0 : i32
    %c0_i32_0 = arith.constant 0 : i32
    return %c0_i32, %arg1 : i32, i32
  }
  func.func @transform_6(%arg0: i32, %arg1: i32, %arg2: i32) -> (i32, i32) {
    %c0_i32 = arith.constant 0 : i32
    %c0_i32_0 = arith.constant 0 : i32
    return %c0_i32, %arg1 : i32, i32
  }
  func.func @transform_7(%arg0: i32, %arg1: i32, %arg2: i32) -> (i32, i32) {
    %c0_i32 = arith.constant 0 : i32
    %c0_i32_0 = arith.constant 0 : i32
    return %c0_i32, %arg1 : i32, i32
  }
  func.func @transform_8(%arg0: i32, %arg1: i32, %arg2: i32) -> (i32, i32) {
    %c0_i32 = arith.constant 0 : i32
    return %arg0, %arg1 : i32, i32
  }
}

</mosaic_0001>

<bundles_post_ra>
// kernel: tpu_custom_call.1
= control target key start
LH: loop header
LB: loop body
LE: loop exit
PB: predicated region body
PF: predicated region fallthrough
CT: control target
= control target key end

     0   :  { %13 = vsyncpa [#allocation4], 0  ;;  %s742_s0 = inlined_call_operand.hbm [shape: f32[8,128], index: 0, kind: input, shape index: {}]   ;;  %s743_s1 = inlined_call_operand.vmem [shape: f32[128,128], index: 1, kind: input, shape index: {}]   ;;  %s744_s2 = inlined_call_operand.hbm [shape: f32[128,128], index: 2, kind: input, shape index: {}]   ;;  %s745_s3 = inlined_call_operand.vmem [shape: f32[128,1], index: 3, kind: input, shape index: {}]   ;;  %s746_s4 = inlined_call_operand.vmem [shape: f32[1,128], index: 4, kind: input, shape index: {}]   ;;  %s747_s5 = inlined_call_operand.vmem [shape: f32[1,128], index: 5, kind: input, shape index: {}]   ;;  %s748_s6 = inlined_call_operand.vmem [shape: f32[1,128], index: 6, kind: input, shape index: {}]   ;;  %s749_s7 = inlined_call_operand.vmem [shape: f32[1,128], index: 7, kind: input, shape index: {}]   ;;  %s750_s8 = inlined_call_operand.hbm [shape: f32[8,128], index: 8, kind: output, shape index: {}]  }
   0x1   :  { %14 = vsyncpa [#allocation7], 0 }
   0x2   :  { %15 = vsyncpa [#allocation5], 0  ;;  %s511_s27 = smov [#allocation3]   ;;  %s512_s29 = smov [#allocation6]  }
   0x3   :  { %s22_s28 = sshll.u32 %s511_s27, 4  ;;  %s33_s30 = sshll.u32 %s512_s29, 4  ;;  %s23_s28 = int_to_ptr.vmem [resolvable:$true] %s22_s28  ;;  %s565_s30 = int_to_ptr.vmem [resolvable:$true] %s33_s30 }
   0x4   :  { %s439_s11 = scalar_lea.hbm %s742_s0, 128 }
   0x5   :  { %p440_p0 = scmp.ne.s32.totalorder %s742_s0, %s439_s11  ;;  %p443_p1 = scmp.lt.u32.totalorder %s439_s11, %s742_s0 }
   0x7   :  { %p445_p2 = pnand %p443_p1, %p440_p0 }
   0x9   :  { %448 = shalt.err (!%p445_p2)
}
   0xa   :  { %s449_s16 = scalar_lea.vmem %s23_s28, 128  ;;  %p454_p4 = scmp.lt.s32.totalorder %s23_s28, %s23_s28 }
   0xb   :  { %p450_p3 = scmp.ne.s32.totalorder %s23_s28, %s449_s16  ;;  %p455_p5 = scmp.lt.s32.totalorder %s449_s16, %s449_s16 }
   0xd   :  { %p456_p6 = por %p455_p5, %p454_p4 }
   0xf   :  { %p457_p7 = pnand %p456_p6, %p450_p3 }
  0x11   :  { %460 = shalt.err (!%p457_p7)
}
  0x12   :  { %25 = dma.hbm_to_vmem [thread:$0]  %s742_s0, 128, %s23_s28, [#allocation4]  }
  0x13   :  { %s461_s21 = scalar_lea.hbm %s744_s2, 2048 }
  0x14   :  { %p462_p8 = scmp.ne.s32.totalorder %s744_s2, %s461_s21  ;;  %p465_p9 = scmp.lt.u32.totalorder %s461_s21, %s744_s2 }
  0x16   :  { %p467_p10 = pnand %p465_p9, %p462_p8 }
  0x18   :  { %470 = shalt.err (!%p467_p10)
}
  0x19   :  { %s471_s26 = scalar_lea.vmem %s565_s30, 2048  ;;  %p476_p12 = scmp.lt.s32.totalorder %s565_s30, %s565_s30 }
  0x1a   :  { %p472_p11 = scmp.ne.s32.totalorder %s565_s30, %s471_s26  ;;  %p477_p13 = scmp.lt.s32.totalorder %s471_s26, %s471_s26 }
  0x1c   :  { %p478_p0 = por %p477_p13, %p476_p12 }
  0x1e   :  { %p479_p1 = pnand %p478_p0, %p472_p11 }
  0x20   :  { %482 = shalt.err (!%p479_p1)
}
  0x21   :  { %s513_s0 = smov 128   ;;  %s514_s27 = smov 8  }
  0x22   :  { %39 = dma.hbm_to_vmem [thread:$0]  %s744_s2, 2048, %s565_s30, [#allocation7], %s513_s0, %s513_s0, %s514_s27  }
  0x23   :  { %505 = dma.done.wait [#allocation4], 128  }
  0x24   :  { %506 = vsyncadd [#allocation4], 4294967168 }
  0x25   :  { %507 = dma.done.wait [#allocation7], 2048  }
  0x26   :  { %508 = vsyncadd [#allocation7], 4294965248  ;;  %v515_v0 = vmov 0   ;;  %v95_v1 = vld [vmem:[%s745_s3 + $0x10] sm:$0xff]  ;;  %v93_v2 = vld [vmem:[%s745_s3] sm:$0xff]  ;;  %v516_v9 = vmov 0.0|0.0  }
  0x27   :  { %438 = vset.pattern.permute.xlu1 %v515_v0  ;;  %437 = vset.pattern.permute.xlu0 %v515_v0  ;;  %v96_v3 = vld [vmem:[%s745_s3 + $0x18] sm:$0xff]  ;;  %v94_v4 = vld [vmem:[%s745_s3 + $0x8] sm:$0xff]  ;;  %v97_v6 = vld [vmem:[%s745_s3 + $0x20] sm:$0xff]  ;;  %vm517_vm0 = vmmov 0   ;;  %v518_v18 = vmov 0.0   ;;  %s519_s26 = smov [#allocation8]  }
  0x28   :  { %122 = vperm.xlu1 %438, %v95_v1   ;;  %112 = vperm.xlu0 %437, %v93_v2   ;;  %v98_v5 = vld [vmem:[%s745_s3 + $0x28] sm:$0xff]  ;;  %v100_v7 = vld [vmem:[%s745_s3 + $0x38] sm:$0xff]  ;;  %v99_v8 = vld [vmem:[%s745_s3 + $0x30] sm:$0xff]  ;;  %s341_s0 = sshll.u32 %s519_s26, 4  ;;  %s342_s0 = int_to_ptr.vmem [resolvable:$true] %s341_s0 }
  0x29   :  { %404 = vmatprep.subr.bf16.mxu0 %v516_v9  ;;  %v102_v10 = vld [vmem:[%s745_s3 + $0x48] sm:$0xff]  ;;  %v101_v11 = vld [vmem:[%s745_s3 + $0x40] sm:$0xff]  ;;  %v104_v12 = vld [vmem:[%s745_s3 + $0x58] sm:$0xff]  ;;  %401 = vmatprep.mubr.msk.f32.mxu0 %vm517_vm0, %v518_v18  ;;  %p488_p3 = scmp.lt.s32.totalorder %s342_s0, %s342_s0 }
  0x2a   :  { %v103_v13 = vld [vmem:[%s745_s3 + $0x50] sm:$0xff]  ;;  %v106_v14 = vld [vmem:[%s745_s3 + $0x68] sm:$0xff]  ;;  %v105_v15 = vld [vmem:[%s745_s3 + $0x60] sm:$0xff] }
  0x2b   :  { %v108_v16 = vld [vmem:[%s745_s3 + $0x78] sm:$0xff]  ;;  %v107_v17 = vld [vmem:[%s745_s3 + $0x70] sm:$0xff]  ;;  %v648_v19 = vld [vmem:[%s746_s4] ss:$0 sm:$0xff] }
  0x2c   :  { %127 = vperm.xlu1 %438, %v96_v3   ;;  %117 = vperm.xlu0 %437, %v94_v4   ;;  %v77_v23 = vld [vmem:[#allocation6] sm:$0xff]  ;;  %v78_v25 = vld [vmem:[#allocation6 + $0x8] sm:$0xff]  ;;  %v61_v29 = vld [vmem:[%s743_s1] sm:$0xff] }
  0x2d   :  { %v62_v30 = vld [vmem:[%s743_s1 + $0x8] sm:$0xff]  ;;  %v79_v34 = vld [vmem:[#allocation6 + $0x10] sm:$0xff]  ;;  %v80_v35 = vld [vmem:[#allocation6 + $0x18] sm:$0xff] }
  0x2e   :  { %v63_v41 = vld [vmem:[%s743_s1 + $0x10] sm:$0xff]  ;;  %v64_v42 = vld [vmem:[%s743_s1 + $0x18] sm:$0xff]  ;;  %v81_v50 = vld [vmem:[#allocation6 + $0x20] sm:$0xff] }
  0x2f   :  { %v82_v49 = vld [vmem:[#allocation6 + $0x28] sm:$0xff]  ;;  %v66_v54 = vld [vmem:[%s743_s1 + $0x28] sm:$0xff]  ;;  %v65_v55 = vld [vmem:[%s743_s1 + $0x20] sm:$0xff] }
  0x30   :  { %137 = vperm.xlu1 %438, %v98_v5   ;;  %132 = vperm.xlu0 %437, %v97_v6   ;;  %v84_v62 = vld [vmem:[#allocation6 + $0x38] sm:$0xff]  ;;  %v83_v63 = vld [vmem:[#allocation6 + $0x30] sm:$0xff]  ;;  %v67_v4 = vld [vmem:[%s743_s1 + $0x30] sm:$0xff] }
  0x31   :  { %v68_v3 = vld [vmem:[%s743_s1 + $0x38] sm:$0xff]  ;;  %v69_v18 = vld [vmem:[%s743_s1 + $0x40] sm:$0xff] }
  0x34   :  { %147 = vperm.xlu1 %438, %v100_v7   ;;  %142 = vperm.xlu0 %437, %v99_v8  }
  0x38   :  { %157 = vperm.xlu1 %438, %v102_v10   ;;  %152 = vperm.xlu0 %437, %v101_v11  }
  0x3c   :  { %167 = vperm.xlu1 %438, %v104_v12   ;;  %162 = vperm.xlu0 %437, %v103_v13   ;;  %v86_v12 = vld [vmem:[#allocation6 + $0x48] sm:$0xff]  ;;  %v85_v13 = vld [vmem:[#allocation6 + $0x40] sm:$0xff] }
  0x40   :  { %177 = vperm.xlu1 %438, %v106_v14   ;;  %172 = vperm.xlu0 %437, %v105_v15  }
  0x44   :  { %187 = vperm.xlu1 %438, %v108_v16   ;;  %182 = vperm.xlu0 %437, %v107_v17   ;;  %v70_v17 = vld [vmem:[%s743_s1 + $0x48] sm:$0xff] }
  0xa7   :  { %v123_v20 = vpop.permute.xlu1 %122  ;;  %v113_v21 = vpop.permute.xlu0 %112 }
  0xa8   :  { %v196_v22 = vmul.f32 %v648_v19, %v113_v21  ;;  %v198_v31 = vmul.f32 %v648_v19, %v123_v20 }
  0xaa   :  { %v212_v26 = vmul.f32 %v196_v22, %v77_v23  ;;  %v214_v38 = vmul.f32 %v198_v31, %v79_v34  ;;  %v72_v31 = vld [vmem:[%s743_s1 + $0x58] sm:$0xff] }
  0xab   :  { %v118_v24 = vpop.permute.xlu0 %117  ;;  %v128_v28 = vpop.permute.xlu1 %127 }
  0xac   :  { %v197_v27 = vmul.f32 %v648_v19, %v118_v24  ;;  %v199_v32 = vmul.f32 %v648_v19, %v128_v28  ;;  %v228_v36 = vadd.f32 %v212_v26, %v61_v29  ;;  %v230_v45 = vadd.f32 %v214_v38, %v63_v41  ;;  %v88_v26 = vld [vmem:[#allocation6 + $0x58] sm:$0xff] }
  0xae   :  { %v213_v33 = vmul.f32 %v197_v27, %v78_v25  ;;  %v215_v39 = vmul.f32 %v199_v32, %v80_v35  ;;  %v87_v27 = vld [vmem:[#allocation6 + $0x50] sm:$0xff]  ;;  %v71_v32 = vld [vmem:[%s743_s1 + $0x50] sm:$0xff] }
  0xaf   :  { %v138_v43 = vpop.permute.xlu1 %137  ;;  %v133_v44 = vpop.permute.xlu0 %132 }
  0xb0   :  { %v229_v37 = vadd.f32 %v213_v33, %v62_v30  ;;  %v231_v46 = vadd.f32 %v215_v39, %v64_v42  ;;  %v201_v47 = vmul.f32 %v648_v19, %v138_v43  ;;  %v200_v48 = vmul.f32 %v648_v19, %v133_v44  ;;  %v90_v39 = vld [vmem:[#allocation6 + $0x68] sm:$0xff]  ;;  %v74_v44 = vld [vmem:[%s743_s1 + $0x68] sm:$0xff] }
  0xb2   :  { %v405_v40 = vpack.c.bf16 %v229_v37, %v228_v36  ;;  %v217_v51 = vmul.f32 %v201_v47, %v82_v49  ;;  %v216_v52 = vmul.f32 %v200_v48, %v81_v50  ;;  %v408_v53 = vpack.c.bf16 %v231_v46, %v230_v45  ;;  %v73_v45 = vld [vmem:[%s743_s1 + $0x60] sm:$0xff] }
  0xb3   :  { %v148_v56 = vpop.permute.xlu1 %147  ;;  %v143_v57 = vpop.permute.xlu0 %142 }
  0xb4   :  { %406 = vmatpush3.bf16.xpose.msra.mxu0 %v405_v40  ;;  %v233_v58 = vadd.f32 %v217_v51, %v66_v54  ;;  %v232_v59 = vadd.f32 %v216_v52, %v65_v55  ;;  %v203_v60 = vmul.f32 %v648_v19, %v148_v56  ;;  %v202_v61 = vmul.f32 %v648_v19, %v143_v57  ;;  %v89_v40 = vld [vmem:[#allocation6 + $0x60] sm:$0xff]  ;;  %v92_v52 = vld [vmem:[#allocation6 + $0x78] sm:$0xff]  ;;  %v76_v57 = vld [vmem:[%s743_s1 + $0x78] sm:$0xff] }
  0xb5   :  { %407 = vmatprep.subr.bf16.mxu0 %v516_v9 }
  0xb6   :  { %v219_v0 = vmul.f32 %v203_v60, %v84_v62  ;;  %v218_v1 = vmul.f32 %v202_v61, %v83_v63  ;;  %v411_v2 = vpack.c.bf16 %v233_v58, %v232_v59  ;;  %v75_v58 = vld [vmem:[%s743_s1 + $0x70] sm:$0xff]  ;;  %v328_v62 = vlaneseq  ;;  %v322_v63 = vld [vmem:[%s748_s6] sm:$0x1]  ;;  %s483_s6 = scalar_lea.vmem %s342_s0, 128 }
  0xb7   :  { %v158_v5 = vpop.permute.xlu1 %157  ;;  %v153_v6 = vpop.permute.xlu0 %152  ;;  %p484_p2 = scmp.ne.s32.totalorder %s342_s0, %s483_s6  ;;  %p489_p4 = scmp.lt.s32.totalorder %s483_s6, %s483_s6 }
  0xb8   :  { %v235_v7 = vadd.f32 %v219_v0, %v68_v3  ;;  %v234_v8 = vadd.f32 %v218_v1, %v67_v4  ;;  %v205_v10 = vmul.f32 %v648_v19, %v158_v5  ;;  %v204_v11 = vmul.f32 %v648_v19, %v153_v6  ;;  %v323_v0 = vld [vmem:[%s749_s7] sm:$0x1] }
  0xb9   :  { %v324_v1 = vmul.f32 %v323_v0, %v322_v63  ;;  %p490_p5 = por %p489_p4, %p488_p3 }
  0xba   :  { %v221_v14 = vmul.f32 %v205_v10, %v86_v12  ;;  %v220_v15 = vmul.f32 %v204_v11, %v85_v13  ;;  %v414_v16 = vpack.c.bf16 %v235_v7, %v234_v8 }
  0xbb   :  { %v168_v20 = vpop.permute.xlu1 %167  ;;  %v163_v21 = vpop.permute.xlu0 %162  ;;  %p491_p6 = pnand %p490_p5, %p484_p2 }
  0xbc   :  { %409 = vmatpush3.bf16.xpose.msra.mxu0 %v408_v53  ;;  %v237_v22 = vadd.f32 %v221_v14, %v70_v17  ;;  %v236_v23 = vadd.f32 %v220_v15, %v69_v18  ;;  %v207_v24 = vmul.f32 %v648_v19, %v168_v20  ;;  %v206_v25 = vmul.f32 %v648_v19, %v163_v21  ;;  %v91_v53 = vld [vmem:[#allocation6 + $0x70] sm:$0xff] }
  0xbd   :  { %410 = vmatprep.subr.bf16.mxu0 %v516_v9 }
  0xbe   :  { %v223_v28 = vmul.f32 %v207_v24, %v88_v26  ;;  %v222_v29 = vmul.f32 %v206_v25, %v87_v27  ;;  %v417_v30 = vpack.c.bf16 %v237_v22, %v236_v23 }
  0xbf   :  { %v178_v33 = vpop.permute.xlu1 %177  ;;  %v173_v34 = vpop.permute.xlu0 %172 }
  0xc0   :  { %v239_v35 = vadd.f32 %v223_v28, %v72_v31  ;;  %v238_v36 = vadd.f32 %v222_v29, %v71_v32  ;;  %v209_v37 = vmul.f32 %v648_v19, %v178_v33  ;;  %v208_v38 = vmul.f32 %v648_v19, %v173_v34 }
  0xc2   :  { %v225_v41 = vmul.f32 %v209_v37, %v90_v39  ;;  %v224_v42 = vmul.f32 %v208_v38, %v89_v40  ;;  %v420_v43 = vpack.c.bf16 %v239_v35, %v238_v36 }
  0xc3   :  { %v188_v46 = vpop.permute.xlu1 %187  ;;  %v183_v47 = vpop.permute.xlu0 %182 }
  0xc4   :  { %412 = vmatpush3.bf16.xpose.msra.mxu0 %v411_v2  ;;  %v241_v48 = vadd.f32 %v225_v41, %v74_v44  ;;  %v240_v49 = vadd.f32 %v224_v42, %v73_v45  ;;  %v211_v50 = vmul.f32 %v648_v19, %v188_v46  ;;  %v210_v51 = vmul.f32 %v648_v19, %v183_v47  ;;  %v245_v19 = vld [vmem:[#allocation3] sm:$0xff] }
  0xc5   :  { %413 = vmatprep.subr.bf16.mxu0 %v516_v9  ;;  %v329_v2 = vshrl.u32 %v328_v62, 7 }
  0xc6   :  { %v227_v54 = vmul.f32 %v211_v50, %v92_v52  ;;  %v226_v55 = vmul.f32 %v210_v51, %v91_v53  ;;  %v423_v56 = vpack.c.bf16 %v241_v48, %v240_v49 }
  0xc7   :  { %v330_v4 = vsub.s32 0, %v329_v2 }
  0xc8   :  { %v243_v59 = vadd.f32 %v227_v54, %v76_v57  ;;  %v242_v60 = vadd.f32 %v226_v55, %v75_v58 }
  0xca   :  { %v426_v61 = vpack.c.bf16 %v243_v59, %v242_v60 }
  0xcc   :  { %415 = vmatpush3.bf16.xpose.msra.mxu0 %v414_v16 }
  0xcd   :  { %416 = vmatprep.subr.bf16.mxu0 %v516_v9 }
  0xd4   :  { %418 = vmatpush3.bf16.xpose.msra.mxu0 %v417_v30 }
  0xd5   :  { %419 = vmatprep.subr.bf16.mxu0 %v516_v9 }
  0xdc   :  { %421 = vmatpush3.bf16.xpose.msra.mxu0 %v420_v43 }
  0xdd   :  { %422 = vmatprep.subr.bf16.mxu0 %v516_v9 }
  0xe4   :  { %424 = vmatpush3.bf16.xpose.msra.mxu0 %v423_v56 }
  0xe5   :  { %425 = vmatprep.subr.bf16.mxu0 %v516_v9  ;;  %v321_v9 = vld [vmem:[%s747_s5] sm:$0x1] }
  0xe6   :  { %v325_v3 = vadd.f32 %v324_v1, %v321_v9 }
  0xe8   :  { %v331_v5 = vrot.slane %v325_v3, %v330_v4 }
  0xec   :  { %427 = vmatpush3.bf16.xpose.msra.mxu0 %v426_v61 }
  0xf3   :  { %402 = vmatmul.mubr.f32.vlgmr.msra.gmra.mrb[0].mxu0 %v245_v19 }
 0x1c6   :  { %v312_v6 = vpop.f32.mrb[0].mxu0 }
 0x1c7   :  { %v333_v7 = vadd.f32 %v331_v5, %v312_v6  ;;  %v403_v8 = vpop.f32.mrb[1].mxu0 }
 0x1c9   :  { %334 = vst [vmem:[#allocation8] sm:$0xff] %v333_v7 }
 0x1ca   :  { %494 = shalt.err (!%p491_p6)
}
 0x1cb   :  { %s495_s5 = scalar_lea.hbm %s750_s8, 128 }
 0x1cc   :  { %p496_p7 = scmp.ne.s32.totalorder %s750_s8, %s495_s5  ;;  %p499_p8 = scmp.lt.u32.totalorder %s495_s5, %s750_s8 }
 0x1ce   :  { %p501_p9 = pnand %p499_p8, %p496_p7 }
 0x1d0   :  { %504 = shalt.err (!%p501_p9)
}
 0x1d1   :  { %344 = dma.vmem_to_hbm [thread:$0]  %s342_s0, 128, %s750_s8, [#allocation5]  }
 0x1d2   :  { %509 = dma.done.wait [#allocation5], 128  }
 0x1d3   :  { %510 = vsyncadd [#allocation5], 4294967168 }
 0x1d4   :  { %348 = vsyncpa [#allocation4], 1 }
 0x1d5   :  { %349 = vsyncpa [#allocation7], 1 }
 0x1d6   :  { %350 = vsyncpa [#allocation5], 1 }

</bundles_post_ra>
